<compile_context>
chip_gen: v7x
topology: tpu7x:2x2x1
jax: 0.10.0
libtpu: 0.0.40
codegen_flags: <defaults>
</compile_context>

<pallas_src>
import functools

import jax
import jax.numpy as jnp
from jax.experimental import pallas as pl
from jax.experimental.pallas import tpu as pltpu

NEG_SLOPE = 0.01     # F.leaky_relu default negative_slope
HIDDEN = 100         # logical hidden width (nn.Linear(*, 100))
HIDDEN_PAD = 128     # lane-aligned hidden width (zero-padded 100 -> 128)
OUT_DIM = 32


def _leaky_relu(v):
    return jnp.where(v >= 0, v, NEG_SLOPE * v)


def backbone_kernel(t_ref, x_ref,
                    tw1_ref, tb1_ref, tw2_ref, tb2_ref,
                    xw1_ref, xb1_ref, xw2_ref, xb2_ref,
                    o_ref):
    """Fused: rows [0, Bt) = t-MLP(t), rows [Bt, Bt+Bx) = x-MLP(x)."""
    bt = t_ref.shape[0]
    bx = x_ref.shape[0]

    # ---------------- t branch ----------------
    t = t_ref[...]
    if t_ref.shape[1] == 1:
        # K=1 "matmul" is a degenerate outer product: do it on the VPU as a
        # broadcast FMA instead of paying a full MXU pass/drain.
        h_t = t * tw1_ref[...] + tb1_ref[...]            # (Bt,1)*(1,128)+(1,128)
    else:
        h_t = jnp.dot(t, tw1_ref[...],
                      preferred_element_type=jnp.float32) + tb1_ref[...]
    h_t = _leaky_relu(h_t)
    o_t = jnp.dot(h_t, tw2_ref[...],
                  preferred_element_type=jnp.float32) + tb2_ref[...]
    o_ref[pl.ds(0, bt), :] = _leaky_relu(o_t).astype(o_ref.dtype)

    # ---------------- x branch ----------------
    x = x_ref[...]
    h_x = jnp.dot(x, xw1_ref[...],
                  preferred_element_type=jnp.float32) + xb1_ref[...]
    h_x = _leaky_relu(h_x)
    o_x = jnp.dot(h_x, xw2_ref[...],
                  preferred_element_type=jnp.float32) + xb2_ref[...]
    o_ref[pl.ds(bt, bx), :] = _leaky_relu(o_x).astype(o_ref.dtype)


# ------------------------- parameters -------------------------

def init_linear(key, in_dim, out_dim):
    """Deterministic init matching nn.Linear shapes: W (out, in), b (out,)."""
    kw, kb = jax.random.split(key)
    bound = 1.0 / jnp.sqrt(jnp.float32(in_dim))
    w = jax.random.uniform(kw, (out_dim, in_dim), jnp.float32, -bound, bound)
    b = jax.random.uniform(kb, (out_dim,), jnp.float32, -bound, bound)
    return w, b


def make_backbone_params(key, t_dim, x_dim):
    k = jax.random.split(key, 5)
    return {
        "t_l1": init_linear(k[0], t_dim, HIDDEN),
        "t_l2": init_linear(k[1], HIDDEN, OUT_DIM),
        "x_l1": init_linear(k[2], x_dim, HIDDEN),
        "x_l2": init_linear(k[3], HIDDEN, OUT_DIM),
        # self.Linear1 (32 -> 16) exists in __init__ but forward() never uses it.
        "lin1": init_linear(k[4], OUT_DIM, 16),
    }


def prepare_backbone_params(params):
    """One-time kernel-layout prep: transpose to (in, out) and zero-pad the
    hidden dim 100 -> 128.  Done once, outside the per-step forward."""
    def prep(l1, l2):
        (w1, b1), (w2, b2) = l1, l2
        in_dim = w1.shape[1]
        w1t = jnp.zeros((in_dim, HIDDEN_PAD), jnp.float32).at[:, :HIDDEN].set(w1.T)
        b1p = jnp.zeros((1, HIDDEN_PAD), jnp.float32).at[:, :HIDDEN].set(b1)
        w2t = jnp.zeros((HIDDEN_PAD, w2.shape[0]), jnp.float32).at[:HIDDEN, :].set(w2.T)
        b2p = jnp.asarray(b2, jnp.float32).reshape(1, -1)
        return w1t, b1p, w2t, b2p

    return {
        "t": prep(params["t_l1"], params["t_l2"]),
        "x": prep(params["x_l1"], params["x_l2"]),
    }


# ------------------------- forward -------------------------

def backbone_forward(prepped, t, x):
    # pd_forward: promote 1-D t to a column vector.
    if t.ndim == 1:
        t = t.reshape(-1, 1)
    t = jnp.asarray(t, jnp.float32)
    x = jnp.asarray(x, jnp.float32)
    bt, bx = t.shape[0], x.shape[0]

    vmem = pl.BlockSpec(memory_space=pltpu.MemorySpace.VMEM)
    # TODO(synk): for non-toy batch sizes, add a grid over the batch axis with
    # ~512-row activation/output tiles (weights as whole-array blocks, index_map
    # lambda i: (0, 0)) and dimension_semantics=("parallel",) so DMA pipelines
    # and the grid shards across v7x's two TensorCores; keep the per-step VMEM
    # footprint under the 32 MiB default scoped limit.
    return pl.pallas_call(
        backbone_kernel,
        out_shape=jax.ShapeDtypeStruct((bt + bx, OUT_DIM), jnp.float32),
        in_specs=[vmem] * 10,
        out_specs=vmem,
    )(t, x, *prepped["t"], *prepped["x"])


backbone_forward_jit = jax.jit(backbone_forward)


def reference_forward(params, t, x):
    """Pure-JAX reference (uses the original PyTorch-layout params)."""
    if t.ndim == 1:
        t = t.reshape(-1, 1)

    def mlp(v, w1, b1, w2, b2):
        h = jax.nn.leaky_relu(v @ w1.T + b1, NEG_SLOPE)
        return jax.nn.leaky_relu(h @ w2.T + b2, NEG_SLOPE)

    t_tmp = mlp(t, *params["t_l1"], *params["t_l2"])
    x_tmp = mlp(x, *params["x_l1"], *params["x_l2"])
    return jnp.concatenate((t_tmp, x_tmp), axis=0)


if __name__ == "__main__":
    key = jax.random.PRNGKey(0)
    k_param, k_t, k_x = jax.random.split(key, 3)

    batch = 8
    t_dim = 1   # t arrives as a 1-D vector and is reshaped to (-1, 1)
    x_dim = 8

    params = make_backbone_params(k_param, t_dim, x_dim)
    prepped = prepare_backbone_params(params)   # one-time layout prep

    t = jax.random.normal(k_t, (batch,), jnp.float32)        # 1-D path
    x = jax.random.normal(k_x, (batch, x_dim), jnp.float32)

    out = backbone_forward_jit(prepped, t, x)
    out = jax.block_until_ready(out)

    ref = reference_forward(params, t, x)
    assert out.shape == (2 * batch, OUT_DIM), out.shape
    assert jnp.allclose(out, ref, atol=1e-5, rtol=1e-5), "mismatch vs reference"

    print("KERNEL_OK")
</pallas_src>

<mosaic_0001>
module attributes {stable_mosaic.version = 11 : i64} {
  func.func @backbone_kernel(%arg0: memref<8x1xf32, #tpu.memory_space<vmem>>, %arg1: memref<8x8xf32, #tpu.memory_space<vmem>>, %arg2: memref<1x128xf32, #tpu.memory_space<vmem>>, %arg3: memref<1x128xf32, #tpu.memory_space<vmem>>, %arg4: memref<128x32xf32, #tpu.memory_space<vmem>>, %arg5: memref<1x32xf32, #tpu.memory_space<vmem>>, %arg6: memref<8x128xf32, #tpu.memory_space<vmem>>, %arg7: memref<1x128xf32, #tpu.memory_space<vmem>>, %arg8: memref<128x32xf32, #tpu.memory_space<vmem>>, %arg9: memref<1x32xf32, #tpu.memory_space<vmem>>, %arg10: memref<16x32xf32, #tpu.memory_space<vmem>>) attributes {dimension_semantics = [], scalar_prefetch = 0 : i64, scratch_operands = 0 : i64, tpu.core_type = #tpu.core_type<tc>} {
    %c0 = arith.constant 0 : index
    %c0_0 = arith.constant 0 : index
    %0 = vector.load %arg0[%c0, %c0_0] : memref<8x1xf32, #tpu.memory_space<vmem>>, vector<8x1xf32>
    %c0_1 = arith.constant 0 : index
    %c0_2 = arith.constant 0 : index
    %1 = vector.load %arg2[%c0_1, %c0_2] : memref<1x128xf32, #tpu.memory_space<vmem>>, vector<1x128xf32>
    %2 = vector.broadcast %0 : vector<8x1xf32> to vector<8x128xf32>
    %3 = vector.broadcast %1 : vector<1x128xf32> to vector<8x128xf32>
    %4 = arith.mulf %2, %3 : vector<8x128xf32>
    %c0_3 = arith.constant 0 : index
    %c0_4 = arith.constant 0 : index
    %5 = vector.load %arg3[%c0_3, %c0_4] : memref<1x128xf32, #tpu.memory_space<vmem>>, vector<1x128xf32>
    %6 = vector.broadcast %5 : vector<1x128xf32> to vector<8x128xf32>
    %7 = arith.addf %4, %6 : vector<8x128xf32>
    %cst = arith.constant 0.000000e+00 : f32
    %8 = vector.broadcast %cst : f32 to vector<8x128xf32>
    %9 = arith.cmpf oge, %7, %8 : vector<8x128xf32>
    %cst_5 = arith.constant 0.00999999977 : f32
    %10 = vector.broadcast %cst_5 : f32 to vector<8x128xf32>
    %11 = arith.mulf %10, %7 : vector<8x128xf32>
    %12 = arith.select %9, %7, %11 : vector<8x128xi1>, vector<8x128xf32>
    %c0_6 = arith.constant 0 : index
    %c0_7 = arith.constant 0 : index
    %13 = vector.load %arg4[%c0_6, %c0_7] : memref<128x32xf32, #tpu.memory_space<vmem>>, vector<128x32xf32>
    %cst_8 = arith.constant dense<0.000000e+00> : vector<8x32xf32>
    %14 = tpu.matmul %12, %13, %cst_8 {dimension_numbers = #tpu.dot_dimension_numbers<[1], [0], [0], [1], [0, 0, 1, 1], [], []>} : vector<8x128xf32>, vector<128x32xf32>, vector<8x32xf32> -> vector<8x32xf32>
    %c0_9 = arith.constant 0 : index
    %c0_10 = arith.constant 0 : index
    %15 = vector.load %arg5[%c0_9, %c0_10] : memref<1x32xf32, #tpu.memory_space<vmem>>, vector<1x32xf32>
    %16 = vector.broadcast %15 : vector<1x32xf32> to vector<8x32xf32>
    %17 = arith.addf %14, %16 : vector<8x32xf32>
    %cst_11 = arith.constant 0.000000e+00 : f32
    %18 = vector.broadcast %cst_11 : f32 to vector<8x32xf32>
    %19 = arith.cmpf oge, %17, %18 : vector<8x32xf32>
    %cst_12 = arith.constant 0.00999999977 : f32
    %20 = vector.broadcast %cst_12 : f32 to vector<8x32xf32>
    %21 = arith.mulf %20, %17 : vector<8x32xf32>
    %22 = arith.select %19, %17, %21 : vector<8x32xi1>, vector<8x32xf32>
    %c0_13 = arith.constant 0 : index
    %c0_14 = arith.constant 0 : index
    %23 = vector.load %arg10[%c0_13, %c0_14] : memref<16x32xf32, #tpu.memory_space<vmem>>, vector<8x32xf32>
    tpu.vector_store %arg10[%c0_13, %c0_14], %22 {strides = array<i32>} : memref<16x32xf32, #tpu.memory_space<vmem>>, vector<8x32xf32>,
    %c0_15 = arith.constant 0 : index
    %c0_16 = arith.constant 0 : index
    %24 = vector.load %arg1[%c0_15, %c0_16] : memref<8x8xf32, #tpu.memory_space<vmem>>, vector<8x8xf32>
    %c0_17 = arith.constant 0 : index
    %c0_18 = arith.constant 0 : index
    %25 = vector.load %arg6[%c0_17, %c0_18] : memref<8x128xf32, #tpu.memory_space<vmem>>, vector<8x128xf32>
    %cst_19 = arith.constant dense<0.000000e+00> : vector<8x128xf32>
    %26 = tpu.matmul %24, %25, %cst_19 {dimension_numbers = #tpu.dot_dimension_numbers<[1], [0], [0], [1], [0, 0, 1, 1], [], []>} : vector<8x8xf32>, vector<8x128xf32>, vector<8x128xf32> -> vector<8x128xf32>
    %c0_20 = arith.constant 0 : index
    %c0_21 = arith.constant 0 : index
    %27 = vector.load %arg7[%c0_20, %c0_21] : memref<1x128xf32, #tpu.memory_space<vmem>>, vector<1x128xf32>
    %28 = vector.broadcast %27 : vector<1x128xf32> to vector<8x128xf32>
    %29 = arith.addf %26, %28 : vector<8x128xf32>
    %cst_22 = arith.constant 0.000000e+00 : f32
    %30 = vector.broadcast %cst_22 : f32 to vector<8x128xf32>
    %31 = arith.cmpf oge, %29, %30 : vector<8x128xf32>
    %cst_23 = arith.constant 0.00999999977 : f32
    %32 = vector.broadcast %cst_23 : f32 to vector<8x128xf32>
    %33 = arith.mulf %32, %29 : vector<8x128xf32>
    %34 = arith.select %31, %29, %33 : vector<8x128xi1>, vector<8x128xf32>
    %c0_24 = arith.constant 0 : index
    %c0_25 = arith.constant 0 : index
    %35 = vector.load %arg8[%c0_24, %c0_25] : memref<128x32xf32, #tpu.memory_space<vmem>>, vector<128x32xf32>
    %cst_26 = arith.constant dense<0.000000e+00> : vector<8x32xf32>
    %36 = tpu.matmul %34, %35, %cst_26 {dimension_numbers = #tpu.dot_dimension_numbers<[1], [0], [0], [1], [0, 0, 1, 1], [], []>} : vector<8x128xf32>, vector<128x32xf32>, vector<8x32xf32> -> vector<8x32xf32>
    %c0_27 = arith.constant 0 : index
    %c0_28 = arith.constant 0 : index
    %37 = vector.load %arg9[%c0_27, %c0_28] : memref<1x32xf32, #tpu.memory_space<vmem>>, vector<1x32xf32>
    %38 = vector.broadcast %37 : vector<1x32xf32> to vector<8x32xf32>
    %39 = arith.addf %36, %38 : vector<8x32xf32>
    %cst_29 = arith.constant 0.000000e+00 : f32
    %40 = vector.broadcast %cst_29 : f32 to vector<8x32xf32>
    %41 = arith.cmpf oge, %39, %40 : vector<8x32xf32>
    %cst_30 = arith.constant 0.00999999977 : f32
    %42 = vector.broadcast %cst_30 : f32 to vector<8x32xf32>
    %43 = arith.mulf %42, %39 : vector<8x32xf32>
    %44 = arith.select %41, %39, %43 : vector<8x32xi1>, vector<8x32xf32>
    %c8 = arith.constant 8 : index
    %c0_31 = arith.constant 0 : index
    %45 = vector.load %arg10[%c8, %c0_31] : memref<16x32xf32, #tpu.memory_space<vmem>>, vector<8x32xf32>
    tpu.vector_store %arg10[%c8, %c0_31], %44 {strides = array<i32>} : memref<16x32xf32, #tpu.memory_space<vmem>>, vector<8x32xf32>,
    return
  }
}

</mosaic_0001>

<bundles_post_ra>
// kernel: backbone_forward.1
= control target key start
LH: loop header
LB: loop body
LE: loop exit
PB: predicated region body
PF: predicated region fallthrough
CT: control target
= control target key end

     0   :  { %vm168_vm0 = vcmask 64512   ;;  %v555_v2 = vmov 0.0   ;;  %vm556_vm1 = vmmov 0   ;;  %v557_v6 = vmov 0   ;;  %s768_s0 = inlined_call_operand.vmem [shape: f32[8,1], index: 0, kind: input, shape index: {}]   ;;  %s769_s1 = inlined_call_operand.vmem [shape: f32[8,8], index: 1, kind: input, shape index: {}]   ;;  %s770_s2 = inlined_call_operand.vmem [shape: f32[1,128], index: 2, kind: input, shape index: {}]   ;;  %s771_s3 = inlined_call_operand.vmem [shape: f32[1,128], index: 3, kind: input, shape index: {}]   ;;  %s772_s4 = inlined_call_operand.vmem [shape: f32[128,32], index: 4, kind: input, shape index: {}]   ;;  %s773_s5 = inlined_call_operand.vmem [shape: f32[1,32], index: 5, kind: input, shape index: {}]   ;;  %s774_s6 = inlined_call_operand.vmem [shape: f32[8,128], index: 6, kind: input, shape index: {}]   ;;  %s775_s7 = inlined_call_operand.vmem [shape: f32[1,128], index: 7, kind: input, shape index: {}]   ;;  %s776_s8 = inlined_call_operand.vmem [shape: f32[128,32], index: 8, kind: input, shape index: {}]   ;;  %s777_s9 = inlined_call_operand.vmem [shape: f32[1,32], index: 9, kind: input, shape index: {}]   ;;  %s778_s10 = inlined_call_operand.hbm [shape: f32[16,32], index: 10, kind: output, shape index: {}]  }
   0x1   :  { %v160_v0 = vld [vmem:[%s774_s6] sm:$0xff]  ;;  %435 = vmatprep.subr.mxu1 %v555_v2  ;;  %437 = vmatprep.mubr.msk.f32.mxu1 %vm556_vm1, %v555_v2  ;;  %v62_v5 = vld [vmem:[%s772_s4 + $0x8] sm:$0xff]  ;;  %v63_v8 = vld [vmem:[%s772_s4 + $0x10] sm:$0xff]  ;;  %v558_v12 = vmov 0.0|0.0  }
   0x2   :  { %v159_v1 = vld [vmem:[%s769_s1] sm:$0xff]  ;;  %436 = vmatpush3.msra.mxu1 %v160_v0  ;;  %530 = vset.pattern.permute.xlu0 %v557_v6  ;;  %v64_v9 = vld [vmem:[%s772_s4 + $0x18] sm:$0xff]  ;;  %v246_v11 = vld [vmem:[%s776_s8 + $0x8] sm:$0xff] }
   0x3   :  { %v36_v3 = vld [vmem:[%s768_s0] sm:$0xff]  ;;  %438 = vmatmul.mubr.msk.f32.vlgmr.msra.gmra.mrb[0].mxu1 %vm168_vm0, %v159_v1  ;;  %475 = vmatprep.subr.bf16.mxu0 %v558_v12  ;;  %v247_v14 = vld [vmem:[%s776_s8 + $0x10] sm:$0xff]  ;;  %v248_v15 = vld [vmem:[%s776_s8 + $0x18] sm:$0xff]  ;;  %v479_v16 = vpack.c.bf16 %v64_v9, %v63_v8 }
   0x4   :  { %v61_v4 = vld [vmem:[%s772_s4] sm:$0xff]  ;;  %40 = vperm.xlu0 %530, %v36_v3   ;;  %499 = vmatprep.subr.bf16.mxu1 %v558_v12  ;;  %v66_v18 = vld [vmem:[%s772_s4 + $0x28] sm:$0xff]  ;;  %v503_v19 = vpack.c.bf16 %v248_v15, %v247_v14  ;;  %v67_v23 = vld [vmem:[%s772_s4 + $0x30] sm:$0xff] }
   0x5   :  { %v476_v7 = vpack.c.bf16 %v62_v5, %v61_v4  ;;  %v245_v10 = vld [vmem:[%s776_s8] sm:$0xff]  ;;  %432 = vmatprep.mubr.msk.f32.mxu0 %vm556_vm1, %v555_v2  ;;  %v250_v21 = vld [vmem:[%s776_s8 + $0x28] sm:$0xff]  ;;  %472 = vmatprep.mubr.msk.f32.mxu1 %vm556_vm1, %v555_v2  ;;  %v68_v24 = vld [vmem:[%s772_s4 + $0x38] sm:$0xff] }
   0x6   :  { %v500_v13 = vpack.c.bf16 %v246_v11, %v245_v10  ;;  %v65_v17 = vld [vmem:[%s772_s4 + $0x20] sm:$0xff]  ;;  %v251_v26 = vld [vmem:[%s776_s8 + $0x30] sm:$0xff]  ;;  %v252_v27 = vld [vmem:[%s776_s8 + $0x38] sm:$0xff] }
   0x7   :  { %477 = vmatpush3.bf16.msra.mxu0 %v476_v7  ;;  %v249_v20 = vld [vmem:[%s776_s8 + $0x20] sm:$0xff]  ;;  %v482_v22 = vpack.c.bf16 %v66_v18, %v65_v17 }
   0x8   :  { %478 = vmatprep.subr.bf16.mxu0 %v558_v12  ;;  %501 = vmatpush3.bf16.msra.mxu1 %v500_v13  ;;  %v506_v25 = vpack.c.bf16 %v250_v21, %v249_v20 }
   0x9   :  { %502 = vmatprep.subr.bf16.mxu1 %v558_v12 }
   0xb   :  { %480 = vmatpush3.bf16.msra.mxu0 %v479_v16 }
   0xc   :  { %481 = vmatprep.subr.bf16.mxu0 %v558_v12  ;;  %504 = vmatpush3.bf16.msra.mxu1 %v503_v19 }
   0xd   :  { %505 = vmatprep.subr.bf16.mxu1 %v558_v12 }
   0xe   :  { %15 = vsyncpa [#allocation3], 0  ;;  %v485_v28 = vpack.c.bf16 %v68_v24, %v67_v23  ;;  %v69_v29 = vld [vmem:[%s772_s4 + $0x40] sm:$0xff]  ;;  %v70_v30 = vld [vmem:[%s772_s4 + $0x48] sm:$0xff]  ;;  %v509_v31 = vpack.c.bf16 %v252_v27, %v251_v26  ;;  %vm157_vm5 = vcmask 261120   ;;  %s559_s19 = smov [#allocation2]  }
   0xf   :  { %483 = vmatpush3.bf16.msra.mxu0 %v482_v22  ;;  %v253_v32 = vld [vmem:[%s776_s8 + $0x40] sm:$0xff]  ;;  %v254_v33 = vld [vmem:[%s776_s8 + $0x48] sm:$0xff]  ;;  %v488_v34 = vpack.c.bf16 %v70_v30, %v69_v29  ;;  %v71_v35 = vld [vmem:[%s772_s4 + $0x50] sm:$0xff]  ;;  %s347_s20 = sshll.u32 %s559_s19, 4  ;;  %s348_s20 = int_to_ptr.vmem [resolvable:$true] %s347_s20 }
  0x10   :  { %484 = vmatprep.subr.bf16.mxu0 %v558_v12  ;;  %507 = vmatpush3.bf16.msra.mxu1 %v506_v25  ;;  %v72_v36 = vld [vmem:[%s772_s4 + $0x58] sm:$0xff]  ;;  %v512_v37 = vpack.c.bf16 %v254_v33, %v253_v32  ;;  %v255_v38 = vld [vmem:[%s776_s8 + $0x50] sm:$0xff]  ;;  %v73_v41 = vld [vmem:[%s772_s4 + $0x60] sm:$0xff]  ;;  %p536_p1 = scmp.lt.s32.totalorder %s348_s20, %s348_s20 }
  0x11   :  { %508 = vmatprep.subr.bf16.mxu1 %v558_v12  ;;  %v256_v39 = vld [vmem:[%s776_s8 + $0x58] sm:$0xff]  ;;  %v491_v40 = vpack.c.bf16 %v72_v36, %v71_v35  ;;  %v74_v42 = vld [vmem:[%s772_s4 + $0x68] sm:$0xff]  ;;  %v257_v44 = vld [vmem:[%s776_s8 + $0x60] sm:$0xff] }
  0x12   :  { %v515_v43 = vpack.c.bf16 %v256_v39, %v255_v38  ;;  %v258_v45 = vld [vmem:[%s776_s8 + $0x68] sm:$0xff]  ;;  %v494_v46 = vpack.c.bf16 %v74_v42, %v73_v41  ;;  %v75_v47 = vld [vmem:[%s772_s4 + $0x70] sm:$0xff]  ;;  %v76_v48 = vld [vmem:[%s772_s4 + $0x78] sm:$0xff] }
  0x13   :  { %486 = vmatpush3.bf16.msra.mxu0 %v485_v28  ;;  %v518_v49 = vpack.c.bf16 %v258_v45, %v257_v44  ;;  %v497_v50 = vpack.c.bf16 %v76_v48, %v75_v47  ;;  %v259_v51 = vld [vmem:[%s776_s8 + $0x70] sm:$0xff]  ;;  %v260_v52 = vld [vmem:[%s776_s8 + $0x78] sm:$0xff]  ;;  %v358_v54 = vld [vmem:[%s770_s2] ss:$0 sm:$0xff] }
  0x14   :  { %487 = vmatprep.subr.bf16.mxu0 %v558_v12  ;;  %510 = vmatpush3.bf16.msra.mxu1 %v509_v31  ;;  %v521_v53 = vpack.c.bf16 %v260_v52, %v259_v51  ;;  %v359_v55 = vld [vmem:[%s771_s3] ss:$0 sm:$0xff] }
  0x15   :  { %511 = vmatprep.subr.bf16.mxu1 %v558_v12  ;;  %v361_v61 = vld [vmem:[%s775_s7] ss:$0 sm:$0xff] }
  0x16   :  { %v360_v3 = vld [vmem:[%s773_s5] ss:$0 sm:$0xff]  ;;  %s531_s5 = scalar_lea.vmem %s348_s20, 256 }
  0x17   :  { %489 = vmatpush3.bf16.msra.mxu0 %v488_v34  ;;  %v363_v9 = vld [vmem:[%s777_s9] ss:$0 sm:$0xff]  ;;  %p532_p0 = scmp.ne.s32.totalorder %s348_s20, %s531_s5  ;;  %p537_p2 = scmp.lt.s32.totalorder %s531_s5, %s531_s5 }
  0x18   :  { %490 = vmatprep.subr.bf16.mxu0 %v558_v12  ;;  %513 = vmatpush3.bf16.msra.mxu1 %v512_v37 }
  0x19   :  { %514 = vmatprep.subr.bf16.mxu1 %v558_v12  ;;  %p538_p3 = por %p537_p2, %p536_p1 }
  0x1b   :  { %492 = vmatpush3.bf16.msra.mxu0 %v491_v40  ;;  %p539_p4 = pnand %p538_p3, %p532_p0 }
  0x1c   :  { %493 = vmatprep.subr.bf16.mxu0 %v558_v12  ;;  %516 = vmatpush3.bf16.msra.mxu1 %v515_v43 }
  0x1d   :  { %517 = vmatprep.subr.bf16.mxu1 %v558_v12 }
  0x1f   :  { %495 = vmatpush3.bf16.msra.mxu0 %v494_v46 }
  0x20   :  { %496 = vmatprep.subr.bf16.mxu0 %v558_v12  ;;  %519 = vmatpush3.bf16.msra.mxu1 %v518_v49 }
  0x21   :  { %520 = vmatprep.subr.bf16.mxu1 %v558_v12 }
  0x23   :  { %498 = vmatpush3.bf16.msra.mxu0 %v497_v50 }
  0x24   :  { %522 = vmatpush3.bf16.msra.mxu1 %v521_v53 }
  0x83   :  { %v41_v56 = vpop.permute.xlu0 %40 }
  0x84   :  { %v49_v57 = vmul.f32 %v358_v54, %v41_v56 }
  0x86   :  { %v57_v58 = vadd.f32 %v359_v55, %v49_v57 }
  0x88   :  { %vm58_vm2 = vcmp.ge.f32.partialorder %v57_v58, 0.0  ;;  %v59_v59 = vmul.f32 0.01, %v57_v58 }
  0x8a   :  { %v60_v60 = vsel %vm58_vm2, %v57_v58, %v59_v59 }
  0x8b   :  { %433 = vmatmul.mubr.f32.vlgmr.msra.gmra.mrb[0].mxu0 %v60_v60 }
  0xd6   :  { %v238_v62 = vpop.f32.mrb[0].mxu1 }
  0xd7   :  { %v239_v63 = vadd.f32 %v361_v61, %v238_v62  ;;  %v439_v0 = vpop.f32.mrb[1].mxu1 }
  0xd9   :  { %vm242_vm3 = vcmp.ge.f32.partialorder %v239_v63, 0.0  ;;  %v243_v1 = vmul.f32 0.01, %v239_v63 }
  0xdb   :  { %v244_v2 = vsel %vm242_vm3, %v239_v63, %v243_v1 }
  0xdc   :  { %473 = vmatmul.mubr.f32.vlgmr.msra.gmra.mrb[2].mxu1 %v244_v2 }
 0x15e   :  { %v150_v4 = vpop.f32.mrb[0].mxu0 }
 0x15f   :  { %v151_v5 = vadd.f32 %v360_v3, %v150_v4  ;;  %v434_v6 = vpop.f32.mrb[1].mxu0 }
 0x161   :  { %vm154_vm4 = vcmp.ge.f32.partialorder %v151_v5, 0.0  ;;  %v155_v7 = vmul.f32 0.01, %v151_v5 }
 0x163   :  { %v156_v8 = vsel %vm154_vm4, %v151_v5, %v155_v7 }
 0x164   :  { %158 = vst.msk [vmem:[#allocation2] sm:$0xff] %vm157_vm5, %v156_v8 }
 0x1af   :  { %v334_v10 = vpop.f32.mrb[2].mxu1 }
 0x1b0   :  { %v335_v11 = vadd.f32 %v363_v9, %v334_v10  ;;  %v474_v12 = vpop.f32.mrb[3].mxu1 }
 0x1b2   :  { %vm338_vm6 = vcmp.ge.f32.partialorder %v335_v11, 0.0  ;;  %v339_v13 = vmul.f32 0.01, %v335_v11 }
 0x1b4   :  { %v340_v14 = vsel %vm338_vm6, %v335_v11, %v339_v13 }
 0x1b5   :  { %341 = vst.msk [vmem:[#allocation2 + $0x8] sm:$0xff] %vm157_vm5, %v340_v14 }
 0x1b6   :  { %542 = shalt.err (!%p539_p4)
}
 0x1b7   :  { %s543_s9 = scalar_lea.hbm %s778_s10, 256 }
 0x1b8   :  { %p544_p5 = scmp.ne.s32.totalorder %s778_s10, %s543_s9  ;;  %p547_p6 = scmp.lt.u32.totalorder %s543_s9, %s778_s10 }
 0x1ba   :  { %p549_p7 = pnand %p547_p6, %p544_p5 }
 0x1bc   :  { %552 = shalt.err (!%p549_p7)
}
 0x1bd   :  { %s560_s0 = smov 128   ;;  %s561_s25 = smov 8  }
 0x1be   :  { %353 = dma.vmem_to_hbm [thread:$0]  %s348_s20, 256, %s778_s10, [#allocation3], %s560_s0, %s560_s0, %s561_s25  }
 0x1bf   :  { %553 = dma.done.wait [#allocation3], 256  }
 0x1c0   :  { %554 = vsyncadd [#allocation3], 4294967040 }
 0x1c1   :  { %357 = vsyncpa [#allocation3], 1 }

</bundles_post_ra>
